<compile_context>
chip_gen: v6e
topology: v6e:2x2x1
jax: 0.10.0
libtpu: 0.0.40
codegen_flags: <defaults>
</compile_context>

<pallas_src>
import math

import jax
import jax.numpy as jnp
from jax import lax
from jax.experimental import pallas as pl
from jax.experimental.pallas import tpu as pltpu


LANE_TILE_MAX = 4096            # lane-axis tile cap (multiple of 128)
TEMPORAL_TILE_MAX = 32          # frames per grid step cap
TARGET_X_BLOCK_BYTES = 8 << 20  # ~8 MiB x blocks (v7x HBM-stream amortization)


def _round_up(x, m):
    return (x + m - 1) // m * m


def _pick_bl(A):
    # Last block dim: multiple of 128, or the full lane extent.
    return A if A <= LANE_TILE_MAX else LANE_TILE_MAX


def _pick_tk(T):
    # 2nd-to-last dim of the x block: multiple of 8, or the full T extent.
    # Must divide T exactly (the T axis is the reduction axis; no garbage frames).
    if T <= TEMPORAL_TILE_MAX:
        return T
    tk = (TEMPORAL_TILE_MAX // 8) * 8
    while tk >= 8:
        if T % tk == 0:
            return tk
        tk -= 8
    # TODO(synk): large T with no multiple-of-8 divisor <= cap; fall back to the
    # whole temporal extent (correct, just a bigger block).
    return T


def _pick_bn(N, target_rows):
    # 2nd-to-last dim of the out block: multiple of 8, or the full N extent.
    if N <= 8:
        return N
    bn = max(8, (int(target_rows) // 8) * 8)
    return min(bn, _round_up(N, 8))


def _measure_kernel(x_ref, w_ref, o_ref, acc_ref):
    # x_ref:   (bn, tk, bl)  input block
    # w_ref:   (tk, bl)      measurement-mask block (shared across the bn rows)
    # o_ref:   (bn, bl)      weighted temporal sum (written at the last t step)
    # acc_ref: (bn, bl) f32  accumulator, resident across the t grid axis
    t = pl.program_id(2)

    @pl.when(t == 0)
    def _():
        acc_ref[...] = jnp.zeros_like(acc_ref)

    tk = x_ref.shape[1]

    def frame_step(i):
        xt = x_ref[:, i, :].astype(jnp.float32)           # (bn, bl)
        wt = w_ref[pl.ds(i, 1), :].astype(jnp.float32)    # (1, bl) -> sublane bcast
        acc_ref[...] += xt * wt                           # per-slice accumulate:
                                                          # no full-block f32 temp

    if tk <= 32:
        for i in range(tk):          # static indices, small fixed trip count
            frame_step(i)
    else:
        def body(i, carry):
            frame_step(i)
            return carry
        lax.fori_loop(0, tk, body, 0)

    @pl.when(t == pl.num_programs(2) - 1)
    def _():
        o_ref[...] = acc_ref[...].astype(o_ref.dtype)


def measurements_forward(x, weight, spatial_size, step, pad_frame_size, patch_shape):
    """Mirrors Measurements.forward (noise=None, mean/std=None)."""
    B, C, T, H, W = x.shape
    PH, PW = pad_frame_size[0]
    n_patch_h, n_patch_w = patch_shape[0]
    S = spatial_size

    assert PH == step * (n_patch_h + 1) and PW == step * (n_patch_w + 1), (
        "pad_frame_size must equal step * (n_patch + 1), as in the torch module")
    assert PH >= H and PW >= W

    N = B * C
    A = H * W
    itemsize = jnp.dtype(x.dtype).itemsize

    # ---- tiling (no host-side copy / pad of x) ----
    tk = _pick_tk(T)
    bl = _pick_bl(A)
    target_rows = max(8, TARGET_X_BLOCK_BYTES // max(1, tk * bl * itemsize))
    bn = _pick_bn(N, target_rows)

    def footprint(bn_):
        xb = bn_ * tk * bl * itemsize
        wb = tk * bl * 4
        ob = bn_ * bl * itemsize
        acc = bn_ * bl * 4
        return 2 * (xb + wb + ob) + acc        # double-buffered blocks + scratch

    try:
        vmem_cap = int(pltpu.get_tpu_info().vmem_capacity_bytes)
    except Exception:
        vmem_cap = 64 * 1024 * 1024            # conservative (v7x per-core)
    budget = max(int(vmem_cap * 0.80), 32 * 1024 * 1024)
    while footprint(bn) > budget and bn > 8:
        bn = max(8, ((bn // 2) // 8) * 8)
    vmem_limit = int(min(budget, max(footprint(bn) + (2 << 20), 32 * 1024 * 1024)))

    l_blocks = pl.cdiv(A, bl)
    n_blocks = pl.cdiv(N, bn)
    t_blocks = pl.cdiv(T, tk)                  # tk divides T (or == T) by construction

    # ---- cheap glue: flatten spatial dims; tile + crop + flatten the mask ----
    x_flat = x.reshape(N, T, A)                # free reshape, no HBM copy
    w_tiled = jnp.tile(weight, (1, n_patch_h + 1, n_patch_w + 1))[:, :H, :W]
    w_flat = w_tiled.reshape(T, A).astype(jnp.float32)   # the dropped pad strip of
                                                         # the padded frame is all-zero

    out_flat = pl.pallas_call(
        _measure_kernel,
        out_shape=jax.ShapeDtypeStruct((N, A), x.dtype),
        grid_spec=pltpu.PrefetchScalarGridSpec(
            num_scalar_prefetch=0,
            grid=(l_blocks, n_blocks, t_blocks),
            in_specs=[
                pl.BlockSpec((bn, tk, bl), lambda l, n, t: (n, t, l)),
                pl.BlockSpec((tk, bl), lambda l, n, t: (t, l)),
            ],
            out_specs=pl.BlockSpec((bn, bl), lambda l, n, t: (n, l)),
            scratch_shapes=[pltpu.VMEM((bn, bl), jnp.float32)],
        ),
        compiler_params=pltpu.CompilerParams(
            dimension_semantics=("parallel", "parallel", "arbitrary"),
            vmem_limit_bytes=vmem_limit,
        ),
    )(x_flat, w_flat)

    out = out_flat.reshape(B, C, H, W)         # == output[:, :, :H, :W], no crop copy

    # ---- rebuild the (zero) pad strip only if needed, then unfold patches ----
    if (PH, PW) != (H, W):
        # TODO(synk): could be emitted directly by the kernel with a padded lane
        # layout; kept on host since the output is T-times smaller than the input.
        out_padded = jnp.zeros((B, C, PH, PW), out.dtype).at[:, :, :H, :W].set(out)
    else:
        out_padded = out

    n_h = (PH - S) // step + 1
    n_w = (PW - S) // step + 1
    if S % step == 0:
        # Unfold via strided step-block slices + reshape/transpose. Covers both
        # non-overlapping (step == S) and overlapping (step == S//2) cases.
        r = S // step
        blocks = out_padded.reshape(B, C, PH // step, step, PW // step, step)
        cols = []
        for b_ in range(r):
            rows = [blocks[:, :, a:a + n_h, :, b_:b_ + n_w, :] for a in range(r)]
            cols.append(jnp.stack(rows, axis=3))      # (B,C,i,a,rr,j,ss)
        p = jnp.stack(cols, axis=6)                   # (B,C,i,a,rr,j,b,ss)
        p = jnp.transpose(p, (0, 1, 2, 5, 3, 4, 6, 7)).reshape(B, C, n_h, n_w, S, S)
    else:
        # TODO(synk): rare odd-S overlapping case; general-gather fallback.
        hi = jnp.arange(n_h)[:, None] * step + jnp.arange(S)[None, :]
        wi = jnp.arange(n_w)[:, None] * step + jnp.arange(S)[None, :]
        p = out_padded[:, :, hi[:, None, :, None], wi[None, :, None, :]]
    p = jnp.transpose(p, (0, 1, 2, 3, 5, 4))          # torch .permute(0,1,2,3,5,4)
    patches = p.reshape(B, C * n_h * n_w, S * S)

    # TODO(synk): add_noise (training-time random-SNR Gaussian) and the mean/std
    # patch-normalization branches of Measurements.forward are not implemented.
    return patches, out


def init_weight(key, temporal_size, step, bernoulli_p):
    """Deterministic re-implementation of Measurements.reset_parameters."""
    n = temporal_size
    stdv = 1.0 / math.sqrt(n)
    k1, k2, k3 = jax.random.split(key, 3)
    shape = (temporal_size, step, step)
    bern = jax.random.bernoulli(k1, bernoulli_p / 100.0, shape)
    neg = jax.random.uniform(k2, shape, minval=-stdv, maxval=0.0)
    pos = jax.random.uniform(k3, shape, minval=0.0, maxval=stdv)
    return jnp.where(bern, pos, neg).astype(jnp.float32)


if __name__ == "__main__":
    key = jax.random.PRNGKey(0)

    def run_case(case_key, overlapping, H, W):
        B, C, T = 2, 3, 4
        spatial_size = 8
        bernoulli_p = 50
        step = spatial_size // 2 if overlapping else spatial_size
        n_patch_h = math.ceil(H / step) - 1
        n_patch_w = math.ceil(W / step) - 1
        pad_frame_size = [(step * (n_patch_h + 1), step * (n_patch_w + 1))]
        patch_shape = [(n_patch_h, n_patch_w)]

        kx, kw = jax.random.split(case_key)
        x = jax.random.normal(kx, (B, C, T, H, W), dtype=jnp.float32)
        weight = init_weight(kw, T, step, bernoulli_p)

        patches, cropped = measurements_forward(
            x, weight, spatial_size, step, pad_frame_size, patch_shape)
        jax.block_until_ready((patches, cropped))

        # ---- pure-JAX reference of the torch forward ----
        PH, PW = pad_frame_size[0]
        x_pad = jnp.zeros((B, C, T, PH, PW), x.dtype).at[:, :, :, :H, :W].set(x)
        w_full = jnp.tile(weight, (1, n_patch_h + 1, n_patch_w + 1))
        ref_out = jnp.sum(x_pad * w_full[None, None], axis=2)       # (B,C,PH,PW)
        S = spatial_size
        n_h = (PH - S) // step + 1
        n_w = (PW - S) // step + 1
        ref_patches = jnp.stack(
            [jnp.stack(
                [ref_out[:, :, i * step:i * step + S, j * step:j * step + S]
                 for j in range(n_w)], axis=2)
             for i in range(n_h)], axis=2)                          # (B,C,n_h,n_w,S,S)
        ref_patches = jnp.transpose(ref_patches, (0, 1, 2, 3, 5, 4)).reshape(
            B, C * n_h * n_w, S * S)

        assert patches.shape == ref_patches.shape
        assert cropped.shape == (B, C, H, W)
        assert jnp.allclose(cropped, ref_out[:, :, :H, :W], atol=1e-5, rtol=1e-5)
        assert jnp.allclose(patches, ref_patches, atol=1e-5, rtol=1e-5)

    k1, k2, k3 = jax.random.split(key, 3)
    run_case(k1, overlapping=False, H=12, W=12)  # padded frame + reshape unfold
    run_case(k2, overlapping=True, H=12, W=12)   # overlapping strided-slice unfold
    run_case(k3, overlapping=False, H=16, W=16)  # no-pad fast path
    print("KERNEL_OK")
</pallas_src>

<mosaic_0001>
module attributes {stable_mosaic.version = 11 : i64} {
  func.func @_measure_kernel(%arg0: i32, %arg1: i32, %arg2: i32, %arg3: memref<6x4x144xf32, #tpu.memory_space<vmem>>, %arg4: memref<4x144xf32, #tpu.memory_space<vmem>>, %arg5: memref<6x144xf32, #tpu.memory_space<vmem>>, %arg6: memref<6x144xf32, #tpu.memory_space<vmem>>) attributes {dimension_semantics = [#tpu.dimension_semantics<parallel>, #tpu.dimension_semantics<parallel>, #tpu.dimension_semantics<arbitrary>], iteration_bounds = array<i64: 1, 1, 1>, scalar_prefetch = 0 : i64, scratch_operands = 1 : i64, tpu.core_type = #tpu.core_type<tc>, window_params = [{transform_indices = @transform_0, window_bounds = array<i64: 6, 4, 144>}, {transform_indices = @transform_1, window_bounds = array<i64: 4, 144>}, {transform_indices = @transform_2, window_bounds = array<i64: 6, 144>}]} {
    %c0_i32 = arith.constant 0 : i32
    %0 = arith.cmpi eq, %arg2, %c0_i32 : i32
    %1 = arith.extui %0 : i1 to i32
    %c0_i32_0 = arith.constant 0 : i32
    %2 = arith.cmpi ne, %1, %c0_i32_0 : i32
    scf.if %2 {
      %cst = arith.constant 0.000000e+00 : f32
      %38 = vector.broadcast %cst : f32 to vector<6x144xf32>
      %c0_35 = arith.constant 0 : index
      %c0_36 = arith.constant 0 : index
      %39 = vector.load %arg6[%c0_35, %c0_36] : memref<6x144xf32, #tpu.memory_space<vmem>>, vector<6x144xf32>
      tpu.vector_store %arg6[%c0_35, %c0_36], %38 {strides = array<i32>} : memref<6x144xf32, #tpu.memory_space<vmem>>, vector<6x144xf32>,
    } else {
    }
    %c0 = arith.constant 0 : index
    %c0_1 = arith.constant 0 : index
    %c0_2 = arith.constant 0 : index
    %3 = vector.load %arg3[%c0, %c0_1, %c0_2] : memref<6x4x144xf32, #tpu.memory_space<vmem>>, vector<6x1x144xf32>
    %4 = vector.shape_cast %3 : vector<6x1x144xf32> to vector<6x144xf32>
    %c0_3 = arith.constant 0 : index
    %c0_4 = arith.constant 0 : index
    %5 = vector.load %arg4[%c0_3, %c0_4] : memref<4x144xf32, #tpu.memory_space<vmem>>, vector<1x144xf32>
    %c0_5 = arith.constant 0 : index
    %c0_6 = arith.constant 0 : index
    %6 = vector.load %arg6[%c0_5, %c0_6] : memref<6x144xf32, #tpu.memory_space<vmem>>, vector<6x144xf32>
    %7 = vector.broadcast %5 : vector<1x144xf32> to vector<6x144xf32>
    %8 = arith.mulf %4, %7 : vector<6x144xf32>
    %9 = arith.addf %6, %8 : vector<6x144xf32>
    %c0_7 = arith.constant 0 : index
    %c0_8 = arith.constant 0 : index
    %10 = vector.load %arg6[%c0_7, %c0_8] : memref<6x144xf32, #tpu.memory_space<vmem>>, vector<6x144xf32>
    tpu.vector_store %arg6[%c0_7, %c0_8], %9 {strides = array<i32>} : memref<6x144xf32, #tpu.memory_space<vmem>>, vector<6x144xf32>,
    %c0_9 = arith.constant 0 : index
    %c1 = arith.constant 1 : index
    %c0_10 = arith.constant 0 : index
    %11 = vector.load %arg3[%c0_9, %c1, %c0_10] : memref<6x4x144xf32, #tpu.memory_space<vmem>>, vector<6x1x144xf32>
    %12 = vector.shape_cast %11 : vector<6x1x144xf32> to vector<6x144xf32>
    %c1_11 = arith.constant 1 : index
    %c0_12 = arith.constant 0 : index
    %13 = vector.load %arg4[%c1_11, %c0_12] : memref<4x144xf32, #tpu.memory_space<vmem>>, vector<1x144xf32>
    %c0_13 = arith.constant 0 : index
    %c0_14 = arith.constant 0 : index
    %14 = vector.load %arg6[%c0_13, %c0_14] : memref<6x144xf32, #tpu.memory_space<vmem>>, vector<6x144xf32>
    %15 = vector.broadcast %13 : vector<1x144xf32> to vector<6x144xf32>
    %16 = arith.mulf %12, %15 : vector<6x144xf32>
    %17 = arith.addf %14, %16 : vector<6x144xf32>
    %c0_15 = arith.constant 0 : index
    %c0_16 = arith.constant 0 : index
    %18 = vector.load %arg6[%c0_15, %c0_16] : memref<6x144xf32, #tpu.memory_space<vmem>>, vector<6x144xf32>
    tpu.vector_store %arg6[%c0_15, %c0_16], %17 {strides = array<i32>} : memref<6x144xf32, #tpu.memory_space<vmem>>, vector<6x144xf32>,
    %c0_17 = arith.constant 0 : index
    %c2 = arith.constant 2 : index
    %c0_18 = arith.constant 0 : index
    %19 = vector.load %arg3[%c0_17, %c2, %c0_18] : memref<6x4x144xf32, #tpu.memory_space<vmem>>, vector<6x1x144xf32>
    %20 = vector.shape_cast %19 : vector<6x1x144xf32> to vector<6x144xf32>
    %c2_19 = arith.constant 2 : index
    %c0_20 = arith.constant 0 : index
    %21 = vector.load %arg4[%c2_19, %c0_20] : memref<4x144xf32, #tpu.memory_space<vmem>>, vector<1x144xf32>
    %c0_21 = arith.constant 0 : index
    %c0_22 = arith.constant 0 : index
    %22 = vector.load %arg6[%c0_21, %c0_22] : memref<6x144xf32, #tpu.memory_space<vmem>>, vector<6x144xf32>
    %23 = vector.broadcast %21 : vector<1x144xf32> to vector<6x144xf32>
    %24 = arith.mulf %20, %23 : vector<6x144xf32>
    %25 = arith.addf %22, %24 : vector<6x144xf32>
    %c0_23 = arith.constant 0 : index
    %c0_24 = arith.constant 0 : index
    %26 = vector.load %arg6[%c0_23, %c0_24] : memref<6x144xf32, #tpu.memory_space<vmem>>, vector<6x144xf32>
    tpu.vector_store %arg6[%c0_23, %c0_24], %25 {strides = array<i32>} : memref<6x144xf32, #tpu.memory_space<vmem>>, vector<6x144xf32>,
    %c0_25 = arith.constant 0 : index
    %c3 = arith.constant 3 : index
    %c0_26 = arith.constant 0 : index
    %27 = vector.load %arg3[%c0_25, %c3, %c0_26] : memref<6x4x144xf32, #tpu.memory_space<vmem>>, vector<6x1x144xf32>
    %28 = vector.shape_cast %27 : vector<6x1x144xf32> to vector<6x144xf32>
    %c3_27 = arith.constant 3 : index
    %c0_28 = arith.constant 0 : index
    %29 = vector.load %arg4[%c3_27, %c0_28] : memref<4x144xf32, #tpu.memory_space<vmem>>, vector<1x144xf32>
    %c0_29 = arith.constant 0 : index
    %c0_30 = arith.constant 0 : index
    %30 = vector.load %arg6[%c0_29, %c0_30] : memref<6x144xf32, #tpu.memory_space<vmem>>, vector<6x144xf32>
    %31 = vector.broadcast %29 : vector<1x144xf32> to vector<6x144xf32>
    %32 = arith.mulf %28, %31 : vector<6x144xf32>
    %33 = arith.addf %30, %32 : vector<6x144xf32>
    %c0_31 = arith.constant 0 : index
    %c0_32 = arith.constant 0 : index
    %34 = vector.load %arg6[%c0_31, %c0_32] : memref<6x144xf32, #tpu.memory_space<vmem>>, vector<6x144xf32>
    tpu.vector_store %arg6[%c0_31, %c0_32], %33 {strides = array<i32>} : memref<6x144xf32, #tpu.memory_space<vmem>>, vector<6x144xf32>,
    %c0_i32_33 = arith.constant 0 : i32
    %35 = arith.cmpi eq, %arg2, %c0_i32_33 : i32
    %36 = arith.extui %35 : i1 to i32
    %c0_i32_34 = arith.constant 0 : i32
    %37 = arith.cmpi ne, %36, %c0_i32_34 : i32
    scf.if %37 {
      %c0_35 = arith.constant 0 : index
      %c0_36 = arith.constant 0 : index
      %38 = vector.load %arg6[%c0_35, %c0_36] : memref<6x144xf32, #tpu.memory_space<vmem>>, vector<6x144xf32>
      %c0_37 = arith.constant 0 : index
      %c0_38 = arith.constant 0 : index
      %39 = vector.load %arg5[%c0_37, %c0_38] : memref<6x144xf32, #tpu.memory_space<vmem>>, vector<6x144xf32>
      tpu.vector_store %arg5[%c0_37, %c0_38], %38 {strides = array<i32>} : memref<6x144xf32, #tpu.memory_space<vmem>>, vector<6x144xf32>,
    } else {
    }
    return
  }
  func.func @transform_0(%arg0: i32, %arg1: i32, %arg2: i32) -> (i32, i32, i32) {
    %c0_i32 = arith.constant 0 : i32
    return %arg1, %arg2, %arg0 : i32, i32, i32
  }
  func.func @transform_1(%arg0: i32, %arg1: i32, %arg2: i32) -> (i32, i32) {
    %c0_i32 = arith.constant 0 : i32
    return %arg2, %arg0 : i32, i32
  }
  func.func @transform_2(%arg0: i32, %arg1: i32, %arg2: i32) -> (i32, i32) {
    %c0_i32 = arith.constant 0 : i32
    return %arg1, %arg0 : i32, i32
  }
}

</mosaic_0001>

<bundles_post_ra>
// kernel: tpu_custom_call.1
= control target key start
LH: loop header
LB: loop body
LE: loop exit
PB: predicated region body
PF: predicated region fallthrough
CT: control target
= control target key end

     0   :  { %7 = vsyncpa [#allocation4], 0  ;;  %s859_s0 = inlined_call_operand.hbm [shape: f32[6,4,144], index: 0, kind: input, shape index: {}]   ;;  %s860_s1 = inlined_call_operand.hbm [shape: f32[4,144], index: 1, kind: input, shape index: {}]   ;;  %s861_s2 = inlined_call_operand.hbm [shape: f32[6,144], index: 2, kind: output, shape index: {}]  }
   0x1   :  { %8 = vsyncpa [#allocation7], 0 }
   0x2   :  { %9 = vsyncpa [#allocation5], 0  ;;  %s756_s9 = smov [#allocation3]  }
   0x3   :  { %s15_s10 = sshll.u32 %s756_s9, 4  ;;  %s16_s10 = int_to_ptr.vmem [resolvable:$true] %s15_s10 }
   0x4   :  { %s698_s11 = scalar_lea.vmem %s16_s10, 768  ;;  %p703_p1 = scmp.lt.s32.totalorder %s16_s10, %s16_s10 }
   0x5   :  { %p699_p0 = scmp.ne.s32.totalorder %s16_s10, %s698_s11  ;;  %p704_p2 = scmp.lt.s32.totalorder %s698_s11, %s698_s11 }
   0x7   :  { %p705_p3 = por %p704_p2, %p703_p1 }
   0x9   :  { %p706_p4 = pnand %p705_p3, %p699_p0 }
   0xb   :  { %709 = shalt.err (!%p706_p4)
}
   0xc   :  { %s757_s12 = smov 128   ;;  %s758_s13 = smov 8  }
   0xd   :  { %21 = dma.hbm_to_vmem [thread:$0]  %s859_s0, 768, %s16_s10, [#allocation4], %s757_s12, %s757_s12, %s758_s13  }
   0xe   :  { %s759_s16 = smov [#allocation6]  }
   0xf   :  { %s28_s17 = sshll.u32 %s759_s16, 4  ;;  %s29_s17 = int_to_ptr.vmem [resolvable:$true] %s28_s17 }
  0x10   :  { %s718_s18 = scalar_lea.vmem %s29_s17, 128  ;;  %p723_p6 = scmp.lt.s32.totalorder %s29_s17, %s29_s17 }
  0x11   :  { %p719_p5 = scmp.ne.s32.totalorder %s29_s17, %s718_s18  ;;  %p724_p7 = scmp.lt.s32.totalorder %s718_s18, %s718_s18 }
  0x13   :  { %p725_p8 = por %p724_p7, %p723_p6 }
  0x15   :  { %p726_p9 = pnand %p725_p8, %p719_p5 }
  0x17   :  { %729 = shalt.err (!%p726_p9)
}
  0x18   :  { %31 = dma.hbm_to_vmem [thread:$0]  %s860_s1, 128, %s29_s17, [#allocation7]  }
  0x19   :  { %750 = dma.done.wait [#allocation4], 768  }
  0x1a   :  { %751 = vsyncadd [#allocation4], 4294966528 }
  0x1b   :  { %752 = dma.done.wait [#allocation7], 128  }
  0x1c   :  { %753 = vsyncadd [#allocation7], 4294967168  ;;  %vm43_vm0 = vcmask 128000   ;;  %v60_v0 = vlaneseq  ;;  %v760_v1 = vmov 0.0   ;;  %v761_v3 = vmov 1966171168  }
  0x1d   :  { %42 = vst [vmem:[#allocation2] sm:$0x3f] %v760_v1  ;;  %44 = vst.msk [vmem:[#allocation2 + $0x8] sm:$0x3f] %vm43_vm0, %v760_v1  ;;  %v71_v4 = vunpack.c.l.s4 %v761_v3  ;;  %s762_s0 = smov [#allocation8]  }
  0x1e   :  { %v61_v2 = vshrl.u32 %v60_v0, 7  ;;  %v56_v8 = vld [vmem:[#allocation6] ss:$4 sm:$0x3]  ;;  %s673_s1 = sshll.u32 %s762_s0, 4  ;;  %s674_s1 = int_to_ptr.vmem [resolvable:$true] %s673_s1 }
  0x1f   :  { %v72_v7 = vunpack.c.0.s8 %v71_v4  ;;  %v211_v14 = vld [vmem:[#allocation6 + $0x1] ss:$4 sm:$0x3]  ;;  %v45_v19 = vld [vmem:[#allocation3] ss:$4 sm:$0x3]  ;;  %p735_p11 = scmp.lt.s32.totalorder %s674_s1, %s674_s1 }
  0x20   :  { %v785_v5 = vsub.s32 0, %v61_v2  ;;  %v787_v6 = vsub.s32 1, %v61_v2  ;;  %v47_v20 = vld [vmem:[#allocation3 + $0x8] ss:$4 sm:$0x3]  ;;  %s730_s21 = scalar_lea.vmem %s674_s1, 256 }
  0x21   :  { %v791_v11 = vsub.s32 %v72_v7, %v61_v2  ;;  %v49_v21 = vld [vmem:[#allocation3 + $0x10] ss:$4 sm:$0x3]  ;;  %v53_v22 = vld [vmem:[#allocation3 + $0x20] ss:$4 sm:$0x3]  ;;  %p731_p10 = scmp.ne.s32.totalorder %s674_s1, %s730_s21  ;;  %p736_p12 = scmp.lt.s32.totalorder %s730_s21, %s730_s21 }
  0x22   :  { %v63_v9 = vrot.slane %v56_v8, %v785_v5  ;;  %v67_v10 = vrot.slane %v56_v8, %v787_v6  ;;  %v218_v17 = vrot.slane %v211_v14, %v785_v5  ;;  %v222_v18 = vrot.slane %v211_v14, %v787_v6  ;;  %v55_v27 = vld [vmem:[#allocation3 + $0x28] ss:$4 sm:$0x3]  ;;  %v365_v30 = vld [vmem:[#allocation6 + $0x2] ss:$4 sm:$0x3] }
  0x23   :  { %v51_v35 = vld [vmem:[#allocation3 + $0x18] ss:$4 sm:$0x3]  ;;  %v372_v39 = vrot.slane %v365_v30, %v785_v5  ;;  %v199_v44 = vld [vmem:[#allocation3 + $0x1] ss:$4 sm:$0x3]  ;;  %v376_v56 = vrot.slane %v365_v30, %v787_v6  ;;  %p737_p13 = por %p736_p12, %p735_p11 }
  0x24   :  { %v68_v12 = vcombine.low %v63_v9, %v67_v10  ;;  %v69_v13 = vcombine.high %v63_v9, %v67_v10  ;;  %v223_v28 = vcombine.low %v218_v17, %v222_v18  ;;  %v224_v29 = vcombine.high %v218_v17, %v222_v18  ;;  %v201_v45 = vld [vmem:[#allocation3 + $0x9] ss:$4 sm:$0x3]  ;;  %v207_v46 = vld [vmem:[#allocation3 + $0x21] ss:$4 sm:$0x3] }
  0x25   :  { %v203_v54 = vld [vmem:[#allocation3 + $0x11] ss:$4 sm:$0x3]  ;;  %v209_v55 = vld [vmem:[#allocation3 + $0x29] ss:$4 sm:$0x3]  ;;  %p738_p0 = pnand %p737_p13, %p731_p10 }
  0x26   :  { %v76_v15 = vrot.slane %v68_v12, %v791_v11  ;;  %v83_v16 = vrot.slane %v69_v13, %v791_v11  ;;  %v231_v37 = vrot.slane %v223_v28, %v791_v11  ;;  %v238_v38 = vrot.slane %v224_v29, %v791_v11  ;;  %v205_v0 = vld [vmem:[#allocation3 + $0x19] ss:$4 sm:$0x3] }
  0x27   :  { %v377_v12 = vcombine.low %v372_v39, %v376_v56 }
  0x28   :  { %v84_v23 = vcombine.high %v76_v15, %v76_v15  ;;  %v85_v24 = vcombine.high %v83_v16, %v83_v16  ;;  %v92_v25 = vrot.slane %v76_v15, %v791_v11  ;;  %v99_v26 = vrot.slane %v83_v16, %v791_v11 }
  0x29   :  { %v239_v47 = vcombine.high %v231_v37, %v231_v37  ;;  %v240_v48 = vcombine.high %v238_v38, %v238_v38  ;;  %v247_v49 = vrot.slane %v231_v37, %v791_v11  ;;  %v254_v50 = vrot.slane %v238_v38, %v791_v11 }
  0x2a   :  { %v106_v31 = vrot.slane %v84_v23, %v791_v11  ;;  %v113_v32 = vrot.slane %v85_v24, %v791_v11  ;;  %v114_v33 = vcombine.high %v92_v25, %v92_v25  ;;  %v122_v34 = vmul.f32 %v92_v25, %v45_v19  ;;  %v57_v25 = vld [vmem:[#allocation2] sm:$0x3f] }
  0x2b   :  { %v126_v36 = vmul.f32 %v99_v26, %v53_v22  ;;  %v261_v57 = vrot.slane %v239_v47, %v791_v11  ;;  %v268_v58 = vrot.slane %v240_v48, %v791_v11  ;;  %v269_v59 = vcombine.high %v247_v49, %v247_v49  ;;  %v363_v47 = vld [vmem:[#allocation3 + $0x2a] ss:$4 sm:$0x3] }
  0x2c   :  { %v115_v40 = vcombine.high %v106_v31, %v106_v31  ;;  %v123_v41 = vmul.f32 %v106_v31, %v47_v20  ;;  %v124_v42 = vmul.f32 %v114_v33, %v49_v21  ;;  %v127_v43 = vmul.f32 %v113_v32, %v55_v27  ;;  %v58_v27 = vld [vmem:[#allocation2 + $0x8] sm:$0x3f] }
  0x2d   :  { %v277_v60 = vmul.f32 %v247_v49, %v199_v44  ;;  %v281_v1 = vmul.f32 %v254_v50, %v207_v46  ;;  %v270_v2 = vcombine.high %v261_v57, %v261_v57  ;;  %v278_v3 = vmul.f32 %v261_v57, %v201_v45  ;;  %v361_v46 = vld [vmem:[#allocation3 + $0x22] ss:$4 sm:$0x3] }
  0x2e   :  { %v125_v51 = vmul.f32 %v115_v40, %v51_v35  ;;  %v134_v52 = vcombine.low %v122_v34, %v123_v41  ;;  %v136_v53 = vcombine.low %v126_v36, %v127_v43  ;;  %v279_v4 = vmul.f32 %v269_v59, %v203_v54  ;;  %v353_v34 = vld [vmem:[#allocation3 + $0x2] ss:$4 sm:$0x3]  ;;  %v355_v35 = vld [vmem:[#allocation3 + $0xa] ss:$4 sm:$0x3] }
  0x2f   :  { %v282_v7 = vmul.f32 %v268_v58, %v209_v55  ;;  %v280_v13 = vmul.f32 %v270_v2, %v205_v0  ;;  %v289_v14 = vcombine.low %v277_v60, %v278_v3  ;;  %v378_v16 = vcombine.high %v372_v39, %v376_v56  ;;  %v357_v39 = vld [vmem:[#allocation3 + $0x12] ss:$4 sm:$0x3]  ;;  %v359_v40 = vld [vmem:[#allocation3 + $0x1a] ss:$4 sm:$0x3] }
  0x30   :  { %v135_v61 = vcombine.low %v124_v42, %v125_v51  ;;  %v143_v62 = vrot.slane %v134_v52, %v791_v11  ;;  %v157_v63 = vrot.slane %v136_v53, %v791_v11  ;;  %v385_v20 = vrot.slane %v377_v12, %v791_v11  ;;  %v519_v53 = vld [vmem:[#allocation6 + $0x3] ss:$4 sm:$0x3] }
  0x31   :  { %v291_v15 = vcombine.low %v281_v1, %v282_v7  ;;  %v290_v21 = vcombine.low %v279_v4, %v280_v13  ;;  %v298_v22 = vrot.slane %v289_v14, %v791_v11  ;;  %v392_v24 = vrot.slane %v378_v16, %v791_v11 }
  0x32   :  { %v150_v8 = vrot.slane %v135_v61, %v791_v11  ;;  %v160_v9 = vcombine.high %v157_v63, %v157_v63  ;;  %v181_v10 = vrot.slane %v157_v63, %v791_v11  ;;  %v393_v29 = vcombine.high %v385_v20, %v385_v20 }
  0x33   :  { %v312_v23 = vrot.slane %v291_v15, %v791_v11  ;;  %v401_v30 = vrot.slane %v385_v20, %v791_v11  ;;  %v305_v31 = vrot.slane %v290_v21, %v791_v11  ;;  %v394_v36 = vcombine.high %v392_v24, %v392_v24  ;;  %v507_v20 = vld [vmem:[#allocation3 + $0x3] ss:$4 sm:$0x3] }
  0x34   :  { %v158_v17 = vcombine.low %v143_v62, %v150_v8  ;;  %v159_v18 = vcombine.high %v143_v62, %v150_v8  ;;  %v188_v19 = vrot.slane %v160_v9, %v791_v11  ;;  %v408_v41 = vrot.slane %v392_v24, %v791_v11 }
  0x35   :  { %v315_v32 = vcombine.high %v312_v23, %v312_v23  ;;  %v336_v33 = vrot.slane %v312_v23, %v791_v11  ;;  %v415_v42 = vrot.slane %v393_v29, %v791_v11  ;;  %v313_v43 = vcombine.low %v298_v22, %v305_v31  ;;  %v515_v23 = vld [vmem:[#allocation3 + $0x23] ss:$4 sm:$0x3] }
  0x36   :  { %v167_v26 = vrot.slane %v158_v17, %v791_v11  ;;  %v174_v28 = vrot.slane %v159_v18, %v791_v11  ;;  %v314_v44 = vcombine.high %v298_v22, %v305_v31  ;;  %v422_v48 = vrot.slane %v394_v36, %v791_v11  ;;  %v509_v22 = vld [vmem:[#allocation3 + $0xb] ss:$4 sm:$0x3]  ;;  %v513_v36 = vld [vmem:[#allocation3 + $0x1b] ss:$4 sm:$0x3] }
  0x37   :  { %v343_v45 = vrot.slane %v315_v32, %v791_v11  ;;  %v423_v51 = vcombine.high %v401_v30, %v401_v30  ;;  %v424_v52 = vcombine.high %v415_v42, %v415_v42  ;;  %v322_v54 = vrot.slane %v313_v43, %v791_v11  ;;  %v517_v31 = vld [vmem:[#allocation3 + $0x2b] ss:$4 sm:$0x3] }
  0x38   :  { %v189_v37 = vcombine.low %v167_v26, %v181_v10  ;;  %v190_v38 = vcombine.low %v174_v28, %v188_v19  ;;  %v329_v55 = vrot.slane %v314_v44, %v791_v11  ;;  %v431_v56 = vmul.f32 %v401_v30, %v353_v34  ;;  %v511_v30 = vld [vmem:[#allocation3 + $0x13] ss:$4 sm:$0x3] }
  0x39   :  { %v432_v57 = vmul.f32 %v415_v42, %v355_v35  ;;  %v433_v58 = vmul.f32 %v423_v51, %v357_v39  ;;  %v434_v59 = vmul.f32 %v424_v52, %v359_v40  ;;  %v435_v60 = vmul.f32 %v408_v41, %v361_v46 }
  0x3a   :  { %v193_v49 = vadd.f32 %v189_v37, %v57_v25  ;;  %v194_v50 = vadd.f32 %v190_v38, %v58_v27  ;;  %v436_v61 = vmul.f32 %v422_v48, %v363_v47  ;;  %v526_v63 = vrot.slane %v519_v53, %v785_v5 }
  0x3b   :  { %v443_v62 = vcombine.low %v431_v56, %v432_v57  ;;  %v444_v0 = vcombine.low %v433_v58, %v434_v59  ;;  %v530_v2 = vrot.slane %v519_v53, %v787_v6  ;;  %v344_v3 = vcombine.low %v322_v54, %v336_v33 }
  0x3c   :  { %195 = vst [vmem:[#allocation2] sm:$0x3f] %v193_v49  ;;  %197 = vst.msk [vmem:[#allocation2 + $0x8] sm:$0x3f] %vm43_vm0, %v194_v50  ;;  %v445_v1 = vcombine.low %v435_v60, %v436_v61  ;;  %v345_v4 = vcombine.low %v329_v55, %v343_v45 }
  0x3d   :  { %v452_v7 = vrot.slane %v443_v62, %v791_v11  ;;  %v459_v8 = vrot.slane %v444_v0, %v791_v11  ;;  %v531_v10 = vcombine.low %v526_v63, %v530_v2  ;;  %v532_v12 = vcombine.high %v526_v63, %v530_v2 }
  0x3e   :  { %v466_v9 = vrot.slane %v445_v1, %v791_v11 }
  0x3f   :  { %v467_v13 = vcombine.low %v452_v7, %v459_v8  ;;  %v468_v15 = vcombine.high %v452_v7, %v459_v8  ;;  %v539_v5 = vrot.slane %v531_v10, %v791_v11  ;;  %v546_v18 = vrot.slane %v532_v12, %v791_v11 }
  0x40   :  { %v469_v14 = vcombine.high %v466_v9, %v466_v9  ;;  %v490_v21 = vrot.slane %v466_v9, %v791_v11 }
  0x41   :  { %v547_v24 = vcombine.high %v539_v5, %v539_v5  ;;  %v548_v25 = vcombine.high %v546_v18, %v546_v18  ;;  %v555_v26 = vrot.slane %v539_v5, %v791_v11  ;;  %v476_v27 = vrot.slane %v467_v13, %v791_v11 }
  0x42   :  { %v483_v28 = vrot.slane %v468_v15, %v791_v11  ;;  %v497_v29 = vrot.slane %v469_v14, %v791_v11  ;;  %v562_v32 = vrot.slane %v546_v18, %v791_v11 }
  0x43   :  { %v212_v16 = vld [vmem:[#allocation2] sm:$0x3f]  ;;  %v213_v17 = vld [vmem:[#allocation2 + $0x8] sm:$0x3f]  ;;  %v569_v33 = vrot.slane %v547_v24, %v791_v11  ;;  %v576_v34 = vrot.slane %v548_v25, %v791_v11  ;;  %v577_v35 = vcombine.high %v555_v26, %v555_v26  ;;  %v585_v37 = vmul.f32 %v555_v26, %v507_v20 }
  0x44   :  { %v348_v6 = vadd.f32 %v344_v3, %v212_v16  ;;  %v349_v19 = vadd.f32 %v345_v4, %v213_v17  ;;  %v589_v38 = vmul.f32 %v562_v32, %v515_v23  ;;  %v498_v43 = vcombine.low %v476_v27, %v490_v21 }
  0x45   :  { %v578_v39 = vcombine.high %v569_v33, %v569_v33  ;;  %v586_v40 = vmul.f32 %v569_v33, %v509_v22  ;;  %v587_v41 = vmul.f32 %v577_v35, %v511_v30  ;;  %v590_v42 = vmul.f32 %v576_v34, %v517_v31 }
  0x46   :  { %350 = vst [vmem:[#allocation2] sm:$0x3f] %v348_v6  ;;  %351 = vst.msk [vmem:[#allocation2 + $0x8] sm:$0x3f] %vm43_vm0, %v349_v19  ;;  %v499_v44 = vcombine.low %v483_v28, %v497_v29 }
  0x47   :  { %v588_v45 = vmul.f32 %v578_v39, %v513_v36  ;;  %v597_v46 = vcombine.low %v585_v37, %v586_v40  ;;  %v599_v47 = vcombine.low %v589_v38, %v590_v42 }
  0x49   :  { %v598_v50 = vcombine.low %v587_v41, %v588_v45  ;;  %v606_v51 = vrot.slane %v597_v46, %v791_v11  ;;  %v620_v52 = vrot.slane %v599_v47, %v791_v11 }
  0x4b   :  { %v613_v55 = vrot.slane %v598_v50, %v791_v11  ;;  %v623_v56 = vcombine.high %v620_v52, %v620_v52  ;;  %v644_v58 = vrot.slane %v620_v52, %v791_v11 }
  0x4d   :  { %v366_v48 = vld [vmem:[#allocation2] sm:$0x3f]  ;;  %v367_v49 = vld [vmem:[#allocation2 + $0x8] sm:$0x3f]  ;;  %v621_v57 = vcombine.low %v606_v51, %v613_v55  ;;  %v622_v59 = vcombine.high %v606_v51, %v613_v55  ;;  %v651_v60 = vrot.slane %v623_v56, %v791_v11 }
  0x4e   :  { %v502_v53 = vadd.f32 %v498_v43, %v366_v48  ;;  %v503_v54 = vadd.f32 %v499_v44, %v367_v49 }
  0x4f   :  { %v630_v61 = vrot.slane %v621_v57, %v791_v11  ;;  %v637_v62 = vrot.slane %v622_v59, %v791_v11 }
  0x50   :  { %504 = vst [vmem:[#allocation2] sm:$0x3f] %v502_v53  ;;  %505 = vst.msk [vmem:[#allocation2 + $0x8] sm:$0x3f] %vm43_vm0, %v503_v54 }
  0x51   :  { %v652_v63 = vcombine.low %v630_v61, %v644_v58  ;;  %v653_v0 = vcombine.low %v637_v62, %v651_v60 }
  0x57   :  { %v520_v1 = vld [vmem:[#allocation2] sm:$0x3f]  ;;  %v521_v2 = vld [vmem:[#allocation2 + $0x8] sm:$0x3f] }
  0x58   :  { %v656_v3 = vadd.f32 %v652_v63, %v520_v1  ;;  %v657_v4 = vadd.f32 %v653_v0, %v521_v2 }
  0x5a   :  { %658 = vst [vmem:[#allocation2] sm:$0x3f] %v656_v3  ;;  %659 = vst.msk [vmem:[#allocation2 + $0x8] sm:$0x3f] %vm43_vm0, %v657_v4 }
  0x61   :  { %v663_v7 = vld [vmem:[#allocation2] sm:$0x3f]  ;;  %v664_v8 = vld [vmem:[#allocation2 + $0x8] sm:$0x3f] }
  0x62   :  { %665 = vst [vmem:[#allocation8] sm:$0x3f] %v663_v7  ;;  %666 = vst.msk [vmem:[#allocation8 + $0x8] sm:$0x3f] %vm43_vm0, %v664_v8 }
  0x63   :  { %741 = shalt.err (!%p738_p0)
}
  0x64   :  { %676 = dma.vmem_to_hbm [thread:$0]  %s674_s1, 256, %s861_s2, [#allocation5]  }
  0x65   :  { %754 = dma.done.wait [#allocation5], 256  }
  0x66   :  { %755 = vsyncadd [#allocation5], 4294967040 }
  0x67   :  { %680 = vsyncpa [#allocation4], 1 }
  0x68   :  { %681 = vsyncpa [#allocation7], 1 }
  0x69   :  { %682 = vsyncpa [#allocation5], 1 }

</bundles_post_ra>
